<compile_context>
chip_gen: v5e
topology: v5e:2x2
jax: 0.10.0
libtpu: 0.0.40
codegen_flags: <defaults>
</compile_context>

<pallas_src>
from functools import partial

import jax
import jax.numpy as jnp
from jax.experimental import pallas as pl
from jax.experimental.pallas import tpu as pltpu


# ----------------------------------------------------------------------------
# pltpu.roll direction probe (tiny one-shot kernel, cached).  The main kernel
# assumes jnp.roll semantics (out[i] == in[(i - shift) % n]); if the installed
# lowering rotates the other way we simply flip the sign of every static shift.
# ----------------------------------------------------------------------------
_ROLL_MATCHES_JNP = None


def _roll_probe_kernel(x_ref, o_ref):
    o_ref[...] = pltpu.roll(x_ref[...], shift=1, axis=1)


def _roll_matches_jnp():
    global _ROLL_MATCHES_JNP
    if _ROLL_MATCHES_JNP is None:
        x = jnp.tile(jnp.arange(128, dtype=jnp.float32)[None, :], (8, 1))
        out = pl.pallas_call(
            _roll_probe_kernel,
            out_shape=jax.ShapeDtypeStruct((8, 128), jnp.float32),
        )(x)
        _ROLL_MATCHES_JNP = bool(out[0, 0] == 127.0)
    return _ROLL_MATCHES_JNP


def _lane_roll(v, shift, size, jnp_like):
    """Circular roll along the last (lane) axis with jnp.roll semantics."""
    s = shift % size
    if s == 0:
        return v
    if not jnp_like:
        s = size - s
    return pltpu.roll(v, shift=s, axis=1)


def _block_kernel(x_ref, dwt_ref, dwb_ref, w1_ref, b1_ref, w2_ref, b2_ref,
                  out_ref, xs_ref, *, H, W, C, eps, roll_jnp_like):
    # x_ref  : (1, C, H*W)  channels-first flattened block (conv input AND residual)
    # dwt_ref: (49, C, 1)   per-tap depthwise weights (k = kh*7 + kw)
    # w1_ref : (4C, C) bf16 (LN affine folded);  w2_ref: (C, 4C) bf16 (gamma folded)
    # xs_ref : (7, C, H*W)  VMEM scratch: the 7 kw-shifted (zero-filled) windows
    HW = H * W
    x = x_ref[0]                                               # (C, HW) f32

    # pixel index p = h*W + w along the lane axis
    lane = jax.lax.broadcasted_iota(jnp.int32, (C, HW), 1)
    if (W & (W - 1)) == 0:
        wpos = jnp.bitwise_and(lane, W - 1)                    # w = p % W
    else:
        wpos = lane % W  # TODO(synk): verify vector int-remainder lowering for non-pow2 W

    # ---- 7 kw-shifted, zero-filled copies of the block (lane roll by kw-3 + W-boundary mask)
    for kw in range(7):
        if kw == 3:
            xs_ref[3] = x
        else:
            r = _lane_roll(x, 3 - kw, HW, roll_jnp_like)
            if kw < 3:
                r = jnp.where(wpos >= (3 - kw), r, 0.0)
            else:
                r = jnp.where(wpos < W - (kw - 3), r, 0.0)
            xs_ref[kw] = r

    # ---- depthwise 7x7: taps regrouped by kh; one extra roll + row mask per kh ----
    acc = jnp.zeros((C, HW), jnp.float32)
    for kh in range(7):
        t = xs_ref[0] * dwt_ref[kh * 7 + 0]
        for kw in range(1, 7):
            t = t + xs_ref[kw] * dwt_ref[kh * 7 + kw]
        if kh != 3:
            t = _lane_roll(t, (3 - kh) * W, HW, roll_jnp_like)
            if kh < 3:
                t = jnp.where(lane >= (3 - kh) * W, t, 0.0)
            else:
                t = jnp.where(lane < HW - (kh - 3) * W, t, 0.0)
        acc = acc + t
    y = acc + dwb_ref[...]                                     # (C, HW) + (C, 1)

    # ---- LayerNorm over channels (sublane axis), single-pass stats; affine folded into w1/b1
    mean = jnp.mean(y, axis=0, keepdims=True)                  # (1, HW)
    msq = jnp.mean(y * y, axis=0, keepdims=True)
    yn = (y - mean) * jax.lax.rsqrt(msq - mean * mean + eps)

    # ---- pwconv1 (C -> 4C), transposed so pixels stay lane-dense; bf16 MXU, f32 accum ----
    h = jnp.dot(w1_ref[...], yn.astype(jnp.bfloat16),
                preferred_element_type=jnp.float32) + b1_ref[...]        # (4C, HW)
    # GELU, tanh approximation (EUP); deviation vs exact erf is ~3e-3 absolute.
    h = 0.5 * h * (1.0 + jnp.tanh(0.7978845608028654 * (h + 0.044715 * (h * h * h))))

    # ---- pwconv2 (4C -> C); layer-scale gamma already folded into w2/b2 ----
    o = jnp.dot(w2_ref[...], h.astype(jnp.bfloat16),
                preferred_element_type=jnp.float32) + b2_ref[...]        # (C, HW)

    # ---- residual add (lane-dense store) ----
    out_ref[0] = (x_ref[0] + o).astype(out_ref.dtype)


def convnext_block_pallas(x_nchw, params):
    (dw_w, dw_b, ln_w, ln_b, w1, b1, w2, b2, gamma) = params
    N, C, H, W = x_nchw.shape
    HW = H * W
    eps = 1e-6

    # Channels-first-flattened layout: no transposes, only free reshapes.
    x_flat = x_nchw.reshape(N, C, HW).astype(jnp.float32)

    # Per-tap depthwise weights, (49, C, 1) so dwt[k] broadcasts along lanes.
    dwt = dw_w.reshape(49, C)[:, :, None].astype(jnp.float32)
    dwb = dw_b.reshape(C, 1).astype(jnp.float32)

    # Fold LN affine into pwconv1 and gamma into pwconv2 (exact in f32), then transpose
    # so both matmuls keep pixels on the lane axis; cast weights to bf16 for the MXU.
    w1t = jnp.transpose(ln_w[:, None] * w1).astype(jnp.bfloat16)          # (4C, C)
    b1f = (b1 + ln_b @ w1).reshape(4 * C, 1).astype(jnp.float32)
    w2t = jnp.transpose(w2 * gamma[None, :]).astype(jnp.bfloat16)         # (C, 4C)
    b2f = (b2 * gamma).reshape(C, 1).astype(jnp.float32)

    kernel = partial(_block_kernel, H=H, W=W, C=C, eps=eps,
                     roll_jnp_like=_roll_matches_jnp())

    out_flat = pl.pallas_call(
        kernel,
        out_shape=jax.ShapeDtypeStruct((N, C, HW), jnp.float32),
        grid=(N,),
        in_specs=[
            pl.BlockSpec((1, C, HW), lambda n: (n, 0, 0)),    # x (conv input + residual)
            pl.BlockSpec((49, C, 1), lambda n: (0, 0, 0)),    # depthwise weights per tap
            pl.BlockSpec((C, 1),     lambda n: (0, 0)),       # depthwise bias
            pl.BlockSpec((4 * C, C), lambda n: (0, 0)),       # pwconv1 weight^T (LN folded, bf16)
            pl.BlockSpec((4 * C, 1), lambda n: (0, 0)),       # pwconv1 bias (LN folded)
            pl.BlockSpec((C, 4 * C), lambda n: (0, 0)),       # pwconv2 weight^T (gamma folded, bf16)
            pl.BlockSpec((C, 1),     lambda n: (0, 0)),       # pwconv2 bias (gamma folded)
        ],
        out_specs=pl.BlockSpec((1, C, HW), lambda n: (n, 0, 0)),
        scratch_shapes=[
            pltpu.VMEM((7, C, HW), jnp.float32),              # 7 kw-shifted windows
        ],
        compiler_params=pltpu.CompilerParams(
            dimension_semantics=("parallel",),
            vmem_limit_bytes=64 * 1024 * 1024,
        ),
    )(x_flat, dwt, dwb, w1t, b1f, w2t, b2f)

    return out_flat.reshape(N, C, H, W)


def convnext_block_ref(x_nchw, params):
    """Plain-JAX f32 reference (mirrors the PyTorch forward exactly, exact-erf GELU)."""
    (dw_w, dw_b, ln_w, ln_b, w1, b1, w2, b2, gamma) = params
    N, C, H, W = x_nchw.shape
    w_oihw = jnp.transpose(dw_w, (2, 0, 1))[:, None, :, :]    # (7,7,C) -> OIHW (C,1,7,7)
    y = jax.lax.conv_general_dilated(
        x_nchw, w_oihw, window_strides=(1, 1), padding=((3, 3), (3, 3)),
        feature_group_count=C, dimension_numbers=("NCHW", "OIHW", "NCHW"),
    ) + dw_b[None, :, None, None]
    y = jnp.transpose(y, (0, 2, 3, 1))                        # NHWC
    mean = y.mean(-1, keepdims=True)
    var = ((y - mean) ** 2).mean(-1, keepdims=True)
    yn = (y - mean) / jnp.sqrt(var + 1e-6) * ln_w + ln_b
    h = yn @ w1 + b1
    h = 0.5 * h * (1.0 + jax.lax.erf(h / jnp.sqrt(2.0)))
    h = h @ w2 + b2
    h = gamma * h
    return x_nchw + jnp.transpose(h, (0, 3, 1, 2))


def make_params(dim, key):
    ks = jax.random.split(key, 9)
    dw_w = jax.random.normal(ks[0], (7, 7, dim), jnp.float32) * 0.1
    dw_b = jax.random.normal(ks[1], (dim,), jnp.float32) * 0.01
    ln_w = 1.0 + 0.1 * jax.random.normal(ks[2], (dim,), jnp.float32)
    ln_b = 0.1 * jax.random.normal(ks[3], (dim,), jnp.float32)
    w1 = jax.random.normal(ks[4], (dim, 4 * dim), jnp.float32) / jnp.sqrt(dim)
    b1 = jax.random.normal(ks[5], (4 * dim,), jnp.float32) * 0.01
    w2 = jax.random.normal(ks[6], (4 * dim, dim), jnp.float32) / jnp.sqrt(4 * dim)
    b2 = jax.random.normal(ks[7], (dim,), jnp.float32) * 0.01
    # Non-trivial layer-scale values so the whole branch is numerically exercised.
    gamma = 0.05 + 0.1 * jax.random.uniform(ks[8], (dim,), jnp.float32)
    return (dw_w, dw_b, ln_w, ln_b, w1, b1, w2, b2, gamma)


if __name__ == "__main__":
    key = jax.random.PRNGKey(0)
    kx, kp = jax.random.split(key)

    N, dim, H, W = 2, 32, 16, 16
    x = jax.random.normal(kx, (N, dim, H, W), jnp.float32)    # NCHW, like the PyTorch module
    params = make_params(dim, kp)

    out = jax.block_until_ready(convnext_block_pallas(x, params))
    ref = jax.block_until_ready(convnext_block_ref(x, params))

    assert out.shape == x.shape and out.dtype == x.dtype
    # Tolerance reflects bf16 MXU operands (f32 accumulation) + tanh-approximated GELU.
    max_err = float(jnp.max(jnp.abs(out - ref)))
    assert jnp.allclose(out, ref, rtol=1e-2, atol=1e-2), max_err
    print("KERNEL_OK")
</pallas_src>

<mosaic_0001>
module attributes {stable_mosaic.version = 11 : i64} {
  func.func @_roll_probe_kernel(%arg0: memref<8x128xf32, #tpu.memory_space<vmem>>, %arg1: memref<8x128xf32, #tpu.memory_space<vmem>>) attributes {dimension_semantics = [], scalar_prefetch = 0 : i64, scratch_operands = 0 : i64, tpu.core_type = #tpu.core_type<tc>} {
    %c0 = arith.constant 0 : index
    %c0_0 = arith.constant 0 : index
    %0 = vector.load %arg0[%c0, %c0_0] : memref<8x128xf32, #tpu.memory_space<vmem>>, vector<8x128xf32>
    %c1_i32 = arith.constant 1 : i32
    %1 = tpu.dynamic_rotate %0 by %c1_i32 dim 1 : vector<8x128xf32>, i32 -> vector<8x128xf32>
    %c0_1 = arith.constant 0 : index
    %c0_2 = arith.constant 0 : index
    %2 = vector.load %arg1[%c0_1, %c0_2] : memref<8x128xf32, #tpu.memory_space<vmem>>, vector<8x128xf32>
    tpu.vector_store %arg1[%c0_1, %c0_2], %1 {strides = array<i32>} : memref<8x128xf32, #tpu.memory_space<vmem>>, vector<8x128xf32>,
    return
  }
}

</mosaic_0001>

<bundles_post_ra>
// kernel: tpu_custom_call.1
= control target key start
LH: loop header
LB: loop body
LE: loop exit
PB: predicated region body
PF: predicated region fallthrough
CT: control target
= control target key end

     0   :  { %6 = vsyncpa [#allocation3], 0  ;;  %s118_s0 = inlined_call_operand.hbm [shape: f32[8,128], index: 0, kind: input, shape index: {}]   ;;  %s119_s1 = inlined_call_operand.hbm [shape: f32[8,128], index: 1, kind: output, shape index: {}]  }
   0x1   :  { %7 = vsyncpa [#allocation4], 0  ;;  %s13_s8 = sshll.u32 %s118_s0, 4  ;;  %s99_s9 = smov [#allocation2]   ;;  %s14_s8 = int_to_ptr.hbm [resolvable:$true] %s13_s8 }
   0x2   :  { %s15_s10 = sshll.u32 %s99_s9, 4  ;;  %s16_s10 = int_to_ptr.vmem [resolvable:$true] %s15_s10 }
   0x3   :  { %18 = dma.hbm_to_vmem [thread:$0]  %s14_s8, 128, %s16_s10, [#allocation3]  }
   0x4   :  { %95 = dma.done.wait [#allocation3], 128  }
   0x5   :  { %96 = vsyncadd [#allocation3], 4294967168  ;;  %v23_v0 = vld [vmem:[#allocation2] sm:$0xff]  ;;  %s100_s11 = smov 1   ;;  %s101_s12 = smov [#allocation5]  }
   0x6   :  { %24 = vrot.lane.b32.xlu0 %v23_v0, %s100_s11  ;;  %s32_s13 = sshll.u32 %s101_s12, 4  ;;  %s34_s16 = sshll.u32 %s119_s1, 4  ;;  %s33_s13 = int_to_ptr.vmem [resolvable:$true] %s32_s13  ;;  %s35_s16 = int_to_ptr.hbm [resolvable:$true] %s34_s16 }
  0x78   :  { %v25_v1 = vpop.permute.xlu0 %24 }
  0x79   :  { %26 = vst [vmem:[#allocation5] sm:$0xff] %v25_v1 }
  0x7a   :  { %37 = dma.vmem_to_hbm [thread:$0]  %s33_s13, 128, %s35_s16, [#allocation4]  }
  0x7b   :  { %97 = dma.done.wait [#allocation4], 128  }
  0x7c   :  { %98 = vsyncadd [#allocation4], 4294967168 }
  0x7d   :  { %42 = vsyncpa [#allocation3], 1 }
  0x7e   :  { %43 = vsyncpa [#allocation4], 1 }

</bundles_post_ra>
